<compile_context>
chip_gen: v6e
topology: v6e:2x2x1
jax: 0.10.0
libtpu: 0.0.40
codegen_flags: <defaults>
</compile_context>

<pallas_src>
import numpy as np
import jax
import jax.numpy as jnp
from jax import lax
from jax.experimental import pallas as pl
from jax.experimental.pallas import tpu as pltpu


def _nil_kernel(a_ref, y_ref, o_ref):
    # a_ref: (G, m, m) bf16,  y_ref: (G, m, T) f32,  o_ref: (1, m, T) f32
    A = a_ref[...].astype(jnp.float32)
    Y = y_ref[...]
    G, m, T = Y.shape

    # P[g] = A[g] @ Y[g]   (batched MXU matmul, f32 accumulate)
    P = jnp.einsum("gij,gjt->git", A, Y, preferred_element_type=jnp.float32)

    # Shift-left matrix S: S[r, c] = 1 iff r == c + 1, so (Y @ S)[:, c] = Y[:, c+1]
    # (0 in the last column).  Shift done on the MXU; avoids unaligned lane slices.
    row = lax.broadcasted_iota(jnp.int32, (T, T), 0)
    col = lax.broadcasted_iota(jnp.int32, (T, T), 1)
    S = (row == col + 1).astype(jnp.float32)
    Y_next = jnp.dot(Y.reshape(G * m, T), S,
                     preferred_element_type=jnp.float32).reshape(G, m, T)

    # Column c (c < T-1):  Y[:, c+1] - P[:, c];  last column masked out.
    diff = Y_next - P
    t_idx = lax.broadcasted_iota(jnp.int32, diff.shape, 2)
    r = jnp.where(t_idx < T - 1, jnp.maximum(diff, 0.0), 0.0)

    # Per-block partial sum: reduce only over the graph axis (cheap VPU adds);
    # the cross-lane/sublane reduction is deferred to the wrapper.
    o_ref[...] = jnp.sum(r, axis=0, keepdims=True)


def nil_reg_pallas(A, Y, *, graphs_per_block=8):
    bs, m, _ = A.shape
    T = Y.shape[-1]
    G = min(graphs_per_block, bs)
    nb = pl.cdiv(bs, G)
    pad = nb * G - bs
    if pad:
        # Zero-padded graphs contribute exactly 0 to the regularizer.
        A = jnp.pad(A, ((0, pad), (0, 0), (0, 0)))
        Y = jnp.pad(Y, ((0, pad), (0, 0), (0, 0)))

    partial = pl.pallas_call(
        _nil_kernel,
        out_shape=jax.ShapeDtypeStruct((nb, m, T), jnp.float32),
        grid_spec=pltpu.PrefetchScalarGridSpec(
            num_scalar_prefetch=0,
            grid=(nb,),
            in_specs=[
                pl.BlockSpec((G, m, m), lambda b: (b, 0, 0)),
                pl.BlockSpec((G, m, T), lambda b: (b, 0, 0)),
            ],
            out_specs=pl.BlockSpec((1, m, T), lambda b: (b, 0, 0)),
        ),
        compiler_params=pltpu.CompilerParams(
            # Per-block partial outputs -> no cross-step carry -> safe to shard
            # the batch axis across TensorCores (v7x megacore); also fine on
            # single-TC v5e/v6e.
            dimension_semantics=("parallel",),
            # Headroom for double-buffered (G,m,m)+(G,m,T) tiles; value is safe
            # on v5e/v6e (128 MiB VMEM) and v7x (64 MiB VMEM).
            vmem_limit_bytes=48 * 1024 * 1024,
        ),
    )(A.astype(jnp.bfloat16), Y.astype(jnp.float32))

    # Tiny final reduction over the (nb, m, T) partials, handled by XLA.
    return jnp.sum(partial)


def coo_to_matrix(edge_index, num_nodes):
    """JAX equivalent of COO_to_matrix: set 1s at (src, tgt) of an (m, m) matrix."""
    A = jnp.zeros((num_nodes, num_nodes), dtype=jnp.float32)
    return A.at[edge_index[0], edge_index[1]].set(1.0)


def nil_reg(y_hat, A_coo, *, num_nodes, graphs_per_block=8):
    """Forward of NILReg.  Adjacency construction is setup glue (one batched
    scatter via vmap); matmul/relu/sum (the hot path) runs in the Pallas kernel."""
    m = num_nodes
    bs = y_hat.shape[0] // m
    A_coo = A_coo.reshape((bs, 2, -1)) % m
    # One batched scatter instead of a Python loop over bs.
    A = jax.vmap(lambda ei: coo_to_matrix(ei, m))(A_coo)
    # `+ torch.eye(m)` is applied AFTER the scatter, so a self-loop edge yields
    # a diagonal value of 2, exactly like PyTorch.
    A = A + jnp.eye(m, dtype=jnp.float32)[None]
    Y = y_hat.reshape((bs, m, -1)).astype(jnp.float32)
    return nil_reg_pallas(A, Y, graphs_per_block=graphs_per_block)


def nil_reg_ref(y_hat, A_coo, *, num_nodes):
    """Pure-JAX reference (explicit block-diagonal matmul) for validation."""
    m = num_nodes
    bs = y_hat.shape[0] // m
    A_coo = A_coo.reshape((bs, 2, -1)) % m
    blocks = [coo_to_matrix(A_coo[b], m) + jnp.eye(m, dtype=jnp.float32)
              for b in range(bs)]
    A = jax.scipy.linalg.block_diag(*blocks)
    return jnp.sum(jnp.maximum(y_hat[:, 1:] - A @ y_hat[:, :-1], 0.0))


if __name__ == "__main__":
    key = jax.random.PRNGKey(0)
    bs, m, T, E = 6, 8, 8, 16          # graphs, nodes/graph, time steps, edges/graph
    k1, k2 = jax.random.split(key)

    # y_hat: (bs*m, T) node time-series predictions
    y_hat = jax.random.normal(k1, (bs * m, T), dtype=jnp.float32)
    # A_coo: batched COO edge indices; reshape((bs, 2, -1)) % m as in PyTorch
    A_coo = jax.random.randint(k2, (bs, 2, E), 0, bs * m, dtype=jnp.int32)

    # graphs_per_block=4 with bs=6 exercises both multi-step grid and padding.
    out = nil_reg(y_hat, A_coo, num_nodes=m, graphs_per_block=4)
    jax.block_until_ready(out)

    ref = nil_reg_ref(y_hat, A_coo, num_nodes=m)
    assert np.allclose(np.asarray(out), np.asarray(ref), rtol=1e-5, atol=1e-5), (out, ref)

    print("KERNEL_OK")
</pallas_src>

<mosaic_0001>
module attributes {stable_mosaic.version = 11 : i64} {
  func.func @_nil_kernel(%arg0: i32, %arg1: memref<4x8x8xbf16, #tpu.memory_space<vmem>>, %arg2: memref<4x8x8xf32, #tpu.memory_space<vmem>>, %arg3: memref<1x8x8xf32, #tpu.memory_space<vmem>>) attributes {dimension_semantics = [#tpu.dimension_semantics<parallel>], iteration_bounds = array<i64: 2>, scalar_prefetch = 0 : i64, scratch_operands = 0 : i64, tpu.core_type = #tpu.core_type<tc>, window_params = [{transform_indices = @transform_0, window_bounds = array<i64: 4, 8, 8>}, {transform_indices = @transform_1, window_bounds = array<i64: 4, 8, 8>}, {transform_indices = @transform_2, window_bounds = array<i64: 1, 8, 8>}]} {
    %c0 = arith.constant 0 : index
    %c0_0 = arith.constant 0 : index
    %c0_1 = arith.constant 0 : index
    %0 = vector.load %arg1[%c0, %c0_0, %c0_1] : memref<4x8x8xbf16, #tpu.memory_space<vmem>>, vector<4x8x8xbf16>
    %1 = arith.extf %0 : vector<4x8x8xbf16> to vector<4x8x8xf32>
    %c0_2 = arith.constant 0 : index
    %c0_3 = arith.constant 0 : index
    %c0_4 = arith.constant 0 : index
    %2 = vector.load %arg2[%c0_2, %c0_3, %c0_4] : memref<4x8x8xf32, #tpu.memory_space<vmem>>, vector<4x8x8xf32>
    "tpu.trace_start"() <{level = 10 : i32, message = "gij,gjt->git"}> : () -> ()
    %cst = arith.constant dense<0.000000e+00> : vector<4x8x8xf32>
    %3 = tpu.matmul %1, %2, %cst {dimension_numbers = #tpu.dot_dimension_numbers<[2], [1], [1], [2], [0, 0, 0, 1, 1, 2], [0], [0]>} : vector<4x8x8xf32>, vector<4x8x8xf32>, vector<4x8x8xf32> -> vector<4x8x8xf32>
    "tpu.trace_stop"() : () -> ()
    %4 = tpu.iota {dimensions = array<i32: 0>} : vector<8x8xi32>
    %5 = tpu.iota {dimensions = array<i32: 1>} : vector<8x8xi32>
    %c1_i32 = arith.constant 1 : i32
    %6 = vector.broadcast %c1_i32 : i32 to vector<8x8xi32>
    %7 = arith.addi %5, %6 : vector<8x8xi32>
    %8 = arith.cmpi eq, %4, %7 : vector<8x8xi32>
    %9 = arith.extui %8 : vector<8x8xi1> to vector<8x8xi32>
    %10 = arith.sitofp %9 : vector<8x8xi32> to vector<8x8xf32>
    %11 = vector.shape_cast %2 : vector<4x8x8xf32> to vector<32x8xf32>
    %cst_5 = arith.constant dense<0.000000e+00> : vector<32x8xf32>
    %12 = tpu.matmul %11, %10, %cst_5 {dimension_numbers = #tpu.dot_dimension_numbers<[1], [0], [0], [1], [0, 0, 1, 1], [], []>} : vector<32x8xf32>, vector<8x8xf32>, vector<32x8xf32> -> vector<32x8xf32>
    %13 = vector.shape_cast %12 : vector<32x8xf32> to vector<4x8x8xf32>
    %14 = arith.subf %13, %3 : vector<4x8x8xf32>
    %15 = tpu.iota {dimensions = array<i32: 2>} : vector<4x8x8xi32>
    %c7_i32 = arith.constant 7 : i32
    %16 = vector.broadcast %c7_i32 : i32 to vector<4x8x8xi32>
    %17 = arith.cmpi slt, %15, %16 : vector<4x8x8xi32>
    %cst_6 = arith.constant 0.000000e+00 : f32
    %18 = vector.broadcast %cst_6 : f32 to vector<4x8x8xf32>
    %19 = arith.maximumf %14, %18 : vector<4x8x8xf32>
    %cst_7 = arith.constant 0.000000e+00 : f32
    %20 = vector.broadcast %cst_7 : f32 to vector<4x8x8xf32>
    %21 = arith.select %17, %19, %20 : vector<4x8x8xi1>, vector<4x8x8xf32>
    %cst_8 = arith.constant dense<0.000000e+00> : vector<8x8xf32>
    %22 = vector.multi_reduction <add>, %21, %cst_8 [0] : vector<4x8x8xf32> to vector<8x8xf32>
    %23 = vector.shape_cast %22 : vector<8x8xf32> to vector<1x8x8xf32>
    %c0_9 = arith.constant 0 : index
    %c0_10 = arith.constant 0 : index
    %c0_11 = arith.constant 0 : index
    %24 = vector.load %arg3[%c0_9, %c0_10, %c0_11] : memref<1x8x8xf32, #tpu.memory_space<vmem>>, vector<1x8x8xf32>
    tpu.vector_store %arg3[%c0_9, %c0_10, %c0_11], %23 {strides = array<i32>} : memref<1x8x8xf32, #tpu.memory_space<vmem>>, vector<1x8x8xf32>,
    return
  }
  func.func @transform_0(%arg0: i32) -> (i32, i32, i32) {
    %c0_i32 = arith.constant 0 : i32
    %c0_i32_0 = arith.constant 0 : i32
    %c0_i32_1 = arith.constant 0 : i32
    return %arg0, %c0_i32, %c0_i32_0 : i32, i32, i32
  }
  func.func @transform_1(%arg0: i32) -> (i32, i32, i32) {
    %c0_i32 = arith.constant 0 : i32
    %c0_i32_0 = arith.constant 0 : i32
    %c0_i32_1 = arith.constant 0 : i32
    return %arg0, %c0_i32, %c0_i32_0 : i32, i32, i32
  }
  func.func @transform_2(%arg0: i32) -> (i32, i32, i32) {
    %c0_i32 = arith.constant 0 : i32
    %c0_i32_0 = arith.constant 0 : i32
    %c0_i32_1 = arith.constant 0 : i32
    return %arg0, %c0_i32, %c0_i32_0 : i32, i32, i32
  }
}

</mosaic_0001>

<bundles_post_ra>
// kernel: tpu_custom_call.1
= control target key start
LH: loop header
LB: loop body
LE: loop exit
PB: predicated region body
PF: predicated region fallthrough
CT: control target
= control target key end

     0   :  { %7 = vsyncpa [#allocation3], 0  ;;  %s1255_s0 = inlined_call_operand.hbm [shape: bf16[8,8,8], index: 0, kind: input, shape index: {}]   ;;  %s1256_s1 = inlined_call_operand.hbm [shape: f32[8,8,8], index: 1, kind: input, shape index: {}]   ;;  %s1257_s2 = inlined_call_operand.hbm [shape: f32[2,8,8], index: 2, kind: output, shape index: {}]  }
   0x1   :  { %9 = vsyncpa [#allocation3 + $0x1], 0 }
   0x2   :  { %10 = vsyncpa [#allocation6], 0 }
   0x3   :  { %12 = vsyncpa [#allocation6 + $0x1], 0 }
   0x4   :  { %13 = vsyncpa [#allocation4], 0 }
   0x5   :  { %15 = vsyncpa [#allocation4 + $0x1], 0  ;;  %s1030_s9 = smov 0   ;;  %s1032_s10 = smov 0  }
   0x6   :  { %s1034_s11 = smov 0   ;;  %s1036_s12 = smov 0  }
   0x7 LB: > { %s1051_s13 = sadd.s32 4294967295, %s1003_s12   ;;  %s742_s14 = sadd.s32 4294967294, %s1003_s12   ;;  %s1003_s12 = sphi %s1036_s12, %s1273_s12   ;;  %s999_s11 = sphi %s1034_s11, %s1272_s11   ;;  %s995_s10 = sphi %s1032_s10, %s1271_s10   ;;  %s991_s9 = sphi %s1030_s9, %s1270_s9  }
   0x8   : > { %s1055_s15 = sadd.s32 1, %s1003_s12   ;;  %s28_s16 = sadd.s32 1, %s999_s11 }
   0x9   : > { %s25_s17 = ssub.s32 %s1003_s12, %s1055_s15  ;;  %p35_p0 = scmp.ne.s32.totalorder %s999_s11, %s995_s10 }
   0xa   : > { %p26_p1 = scmp.eq.s32.totalorder %s25_s17, 0  ;;  %p36_p2 = scmp.eq.s32.totalorder %s1003_s12, 0 }
   0xb   : > { %p41_p3 = scmp.ne.s32.totalorder %s995_s10, %s991_s9  ;;  %p42_p4 = scmp.eq.s32.totalorder %s1051_s13, 0 }
   0xc   : > { %s1067_s18 = scalar_select %p26_p1, %s999_s11, %s28_s16  }
   0xd   : > { %p1069_p5 = por %p36_p2, %p35_p0  ;;  %p1073_p6 = por %p42_p4, %p41_p3 }
   0xe   : > { %p91_p7 = scmp.eq.s32.totalorder %s1051_s13, 1  ;;  %p97_p8 = scmp.eq.s32.totalorder %s742_s14, 1 }
   0xf   : > { %s1261_s20 = scalar_select %p1073_p6, 1, 0 }
  0x10   : > { %p838_p10 = scmp.lt.s32.totalorder %s1003_s12, 2  ;;  %p1080_p11 = por %p91_p7, %p35_p0 }
  0x11   : > { %p1084_p12 = por %p97_p8, %p41_p3  ;;  %s1089_s23 = sand.u32 1, %s999_s11  }
  0x12   : > { %s1262_s21 = scalar_select %p1080_p11, 1, 0 }
  0x13   : > { %s1263_s22 = scalar_select %p1084_p12, 1, 0 }
  0x14   : > { %s769_s24 = sshll.u32 %s1003_s12, 8  ;;  %s745_s25 = sshll.u32 %s1089_s23, 4 }
  0x15   : > { %s1096_s28 = scalar_lea.hbm %s1255_s0, %s769_s24  ;;  %s121_s29 = scalar_lea.vmem [#allocation2], %s745_s25 }
  0x16   : > { %s128_s30 = sshll.u32 %s121_s29, 4  ;;  %p1100_p13 = pnand %p838_p10, %p1069_p5  ;;  %s1104_s30 = int_to_ptr.vmem [resolvable:$true] %s128_s30 }
  0x17   : > { %s118_s4 = scalar_lea.sflag [#allocation3], %s1089_s23  ;;  %s879_s5 = scalar_lea.hbm %s1096_s28, 256 }
  0x18   : > { %p880_p0 = scmp.ne.s32.totalorder %s1096_s28, %s879_s5  ;;  %p881_p1 = pneg %p1100_p13 }
  0x19   : > { %s884_s8 = scalar_lea.hbm %s1255_s0, 512  ;;  %p885_p4 = scmp.lt.s32.totalorder %s1096_s28, %s1255_s0 }
  0x1a   : > { %p882_p2 = pnand %p881_p1, %p880_p0  ;;  %p886_p5 = scmp.lt.s32.totalorder %s884_s8, %s879_s5 }
  0x1c   : > { %p883_p3 = pneg %p882_p2  ;;  %p887_p7 = por %p886_p5, %p885_p4 }
  0x1e   : > { %p888_p8 = pnand %p887_p7, %p883_p3 }
  0x20   : > { %891 = shalt.err (!%p888_p8)
}
  0x21   : > { %s892_s17 = scalar_lea.vmem %s1104_s30, 256  ;;  %s1005_s19 = smov [#allocation2]  }
  0x22   : > { %p893_p10 = scmp.ne.s32.totalorder %s1104_s30, %s892_s17  ;;  %s897_s24 = sshll.u32 %s1005_s19, 4  ;;  %s898_s24 = int_to_ptr.vmem [resolvable:$false] %s897_s24 }
  0x23   : > { %s899_s25 = scalar_lea.vmem %s898_s24, 512  ;;  %p900_p9 = scmp.lt.s32.totalorder %s1104_s30, %s898_s24 }
  0x24   : > { %p895_p0 = pnand %p893_p10, %p881_p1  ;;  %p901_p12 = scmp.lt.s32.totalorder %s899_s25, %s892_s17 }
  0x26   : > { %p896_p2 = pneg %p895_p0  ;;  %p902_p11 = por %p901_p12, %p900_p9 }
  0x28   : > { %p903_p4 = pnand %p902_p11, %p896_p2 }
  0x2a   : > { %906 = shalt.err (!%p903_p4)
}
  0x2b   : > { %s1006_s26 = smov 64   ;;  %s1007_s27 = smov 4  }
  0x2c   : > { %830 = dma.hbm_to_vmem [thread:$0]  (!%p1100_p13), %s1096_s28, 256, %s1104_s30, %s118_s4, %s1006_s26, %s1006_s26, %s1007_s27  }
  0x2d   : > { %p751_p3 = scmp.ge.s32.totalorder %s1003_s12, 1  ;;  %p157_p5 = scmp.lt.s32.totalorder %s1003_s12, 3 }
  0x2e   : > { %s748_s29 = sshll.u32 %s1089_s23, 5  ;;  %s770_s6 = sshll.u32 %s1003_s12, 9 }
  0x2f   : > { %p1136_p9 = pnand %p751_p3, %p157_p5  ;;  %s142_s7 = scalar_lea.vmem [#allocation5], %s748_s29 }
  0x30   : > { %s149_s8 = sshll.u32 %s142_s7, 4  ;;  %s1144_s17 = scalar_lea.hbm %s1256_s1, %s770_s6  ;;  %s1146_s8 = int_to_ptr.vmem [resolvable:$true] %s149_s8 }
  0x31   : > { %s139_s28 = scalar_lea.sflag [#allocation6], %s1089_s23  ;;  %s907_s30 = scalar_lea.hbm %s1144_s17, 512 }
  0x32   : > { %p908_p11 = scmp.ne.s32.totalorder %s1144_s17, %s907_s30  ;;  %s912_s24 = scalar_lea.hbm %s1256_s1, 1024 }
  0x33   : > { %p913_p8 = scmp.lt.s32.totalorder %s1144_s17, %s1256_s1  ;;  %p914_p10 = scmp.lt.s32.totalorder %s912_s24, %s907_s30 }
  0x34   : > { %p910_p12 = pnand %p908_p11, %p881_p1 }
  0x35   : > { %p915_p0 = por %p914_p10, %p913_p8 }
  0x36   : > { %p911_p7 = pneg %p910_p12 }
  0x38   : > { %p916_p2 = pnand %p915_p0, %p911_p7 }
  0x3a   : > { %919 = shalt.err (!%p916_p2)
}
  0x3b   : > { %s920_s27 = scalar_lea.vmem %s1146_s8, 512  ;;  %s1008_s29 = smov [#allocation5]  }
  0x3c   : > { %p921_p4 = scmp.ne.s32.totalorder %s1146_s8, %s920_s27  ;;  %s925_s6 = sshll.u32 %s1008_s29, 4  ;;  %s926_s6 = int_to_ptr.vmem [resolvable:$false] %s925_s6 }
  0x3d   : > { %s927_s7 = scalar_lea.vmem %s926_s6, 1024  ;;  %p928_p11 = scmp.lt.s32.totalorder %s1146_s8, %s926_s6 }
  0x3e   : > { %p923_p3 = pnand %p921_p4, %p881_p1  ;;  %p929_p12 = scmp.lt.s32.totalorder %s927_s7, %s920_s27 }
  0x40   : > { %p924_p5 = pneg %p923_p3  ;;  %p930_p6 = por %p929_p12, %p928_p11 }
  0x42   : > { %p931_p8 = pnand %p930_p6, %p924_p5 }
  0x44   : > { %934 = shalt.err (!%p931_p8)
}
  0x45   : > { %s1009_s14 = smov 128   ;;  %s1010_s16 = smov 8  }
  0x46   : > { %833 = dma.hbm_to_vmem [thread:$0]  (!%p1100_p13), %s1144_s17, 512, %s1146_s8, %s139_s28, %s1009_s14, %s1009_s14, %s1010_s16  }
  0x47   : > { %161 = sbr.rel (%p1136_p9) target bundleno = 311 (0x137), region = 28  ;;  %s1176_s30 = sand.u32 (!%p1136_p9), 1, %s995_s10  }
  0x48   : > { %s752_s4 = sshll.u32 (!%p1136_p9), %s1176_s30, 4  ;;  %s164_s19 = scalar_lea.sflag (!%p1136_p9), [#allocation3], %s1176_s30 }
  0x49   : > { %s167_s24 = scalar_lea.vmem (!%p1136_p9), [#allocation2], %s752_s4  ;;  %p1266_p6 = scmp.ne.s32.totalorder (!%p1136_p9), %s1261_s20, 0 }
  0x4c   : > { %978 = dma.done.wait (%p1266_p6), %s164_s19, 256  }
  0x4d   : > { %980 = vsyncadd (%p1266_p6), %s164_s19, 4294967040  ;;  %s753_s23 = sshll.u32 %s1176_s30, 5  ;;  %s173_s3 = scalar_lea.sflag [#allocation6], %s1176_s30 }
  0x4e   : > { %s1186_s5 = scalar_lea.vmem [#allocation5], %s753_s23 }
  0x4f   : > { %982 = dma.done.wait (%p1266_p6), %s173_s3, 512  }
  0x50   : > { %984 = vsyncadd (%p1266_p6), %s173_s3, 4294966784  ;;  %v509_v0 = vlaneseq  ;;  %v1011_v1 = vmov 0.0   ;;  %vm1012_vm0 = vmmov 0   ;;  %v214_v5 = vld [vmem:[%s1186_s5 + $0x10] sm:$0xff]  ;;  %v212_v6 = vld [vmem:[%s1186_s5] sm:$0xff]  ;;  %vm216_vm2 = vcmask 64512  }
  0x51   : > { %803 = vmatprep.subr.mxu0 %v1011_v1  ;;  %793 = vmatprep.subr.mxu1 %v1011_v1  ;;  %v772_v7 = vld [vmem:[%s167_s24] sm:$0xff]   ;;  %v779_v9 = vld [vmem:[%s167_s24 + $0x8] sm:$0xff]   ;;  %v1013_v11 = vmov 1.0   ;;  %s754_s20 = sshll.u32 %s1176_s30, 3  ;;  %s766_s8 = sshll.u32 %s1051_s13, 7 }
  0x52   : > { %795 = vmatprep.mubr.msk.f32.mxu1 %vm1012_vm0, %v1011_v1  ;;  %805 = vmatprep.mubr.msk.f32.mxu0 %vm1012_vm0, %v1011_v1  ;;  %v510_v2 = vshrl.u32 %v509_v0, 7  ;;  %v512_v3 = vand.u32 127, %v509_v0  ;;  %v773_v8 = vunpack.c.l.bf16 %v772_v7  ;;  %v213_v10 = vld [vmem:[%s1186_s5 + $0x8] sm:$0xff]  ;;  %v777_v12 = vunpack.c.l.bf16 %v779_v9  ;;  %v215_v14 = vld [vmem:[%s1186_s5 + $0x18] sm:$0xff]  ;;  %s201_s17 = scalar_lea.vmem [#allocation7], %s754_s20  ;;  %s647_s27 = scalar_lea.hbm %s1257_s2, %s766_s8 }
  0x53   : > { %804 = vmatpush3.msra.mxu0 %v214_v5  ;;  %794 = vmatpush3.msra.mxu1 %v212_v6  ;;  %v774_v13 = vunpack.c.h.bf16 %v772_v7  ;;  %v778_v15 = vunpack.c.h.bf16 %v779_v9  ;;  %s649_s28 = sshll.u32 %s201_s17, 4  ;;  %s636_s29 = scalar_lea.sflag [#allocation4], %s1176_s30  ;;  %s650_s28 = int_to_ptr.vmem [resolvable:$true] %s649_s28 }
  0x54   : > { %v513_v4 = vadd.s32 1, %v512_v3  ;;  %798 = vmatprep.subr.mxu1 %v1011_v1  ;;  %796 = vmatmul.mubr.msk.f32.vlgmr.msra.gmra.mxu1 %vm216_vm2, %v773_v8  ;;  %vm618_vm3 = vcmp.lt.s32.totalorder %v512_v3, 7  ;;  %s935_s6 = scalar_lea.vmem %s650_s28, 128  ;;  %p1267_p1 = scmp.ne.s32.totalorder %s1262_s21, 0 }
  0x55   : > { %806 = vmatmul.mubr.msk.f32.vlgmr.msra.gmra.mxu0 %vm216_vm2, %v777_v12  ;;  %799 = vmatpush3.msra.mxu1 %v213_v10  ;;  %p936_p13 = scmp.ne.s32.totalorder %s650_s28, %s935_s6  ;;  %s1014_s13 = smov [#allocation7]  }
  0x56   : > { %vm514_vm1 = vcmp.eq.s32.totalorder %v510_v2, %v513_v4  ;;  %800 = vmatprep.mubr.msk.f32.mxu1 %vm1012_vm0, %v1011_v1  ;;  %815 = vmatprep.mubr.msk.f32.mxu0 %vm216_vm2, %v212_v6  ;;  %s939_s7 = sshll.u32 %s1014_s13, 4  ;;  %s940_s7 = int_to_ptr.vmem [resolvable:$false] %s939_s7 }
  0x57   : > { %813 = vmatprep.subr.msk.mxu0 %vm514_vm1, %v1013_v11  ;;  %808 = vmatprep.subr.mxu1 %v1011_v1  ;;  %p937_p9 = pnand %p936_p13, %p1267_p1  ;;  %s941_s14 = scalar_lea.vmem %s940_s7, 256 }
  0x58   : > { %814 = vmatpush3.msk.msra.mxu0 %vm514_vm1, %v1013_v11  ;;  %801 = vmatmul.mubr.msk.f32.vlgmr.msra.gmra.mxu1 %vm216_vm2, %v774_v13  ;;  %p942_p10 = scmp.lt.s32.totalorder %s650_s28, %s940_s7  ;;  %p943_p0 = scmp.lt.s32.totalorder %s941_s14, %s935_s6 }
  0x59   : > { %816 = vmatmul.mubr.msk.f32.vlgmr.msra.gmra.mxu0 %vm216_vm2, %v213_v10  ;;  %809 = vmatpush3.msra.mxu1 %v215_v14  ;;  %p938_p7 = pneg %p937_p9 }
  0x5a   : > { %810 = vmatprep.mubr.msk.f32.mxu1 %vm1012_vm0, %v1011_v1  ;;  %818 = vmatprep.mubr.msk.f32.mxu0 %vm216_vm2, %v214_v5  ;;  %p944_p2 = por %p943_p0, %p942_p10 }
  0x5c   : > { %811 = vmatmul.mubr.msk.f32.vlgmr.msra.gmra.mxu1 %vm216_vm2, %v778_v15  ;;  %p945_p4 = pnand %p944_p2, %p938_p7 }
  0x5d   : > { %819 = vmatmul.mubr.msk.f32.gmra.mxu0 %vm216_vm2, %v215_v14 }
 0x114   : > { %v286_v16 = vpop.f32.mrf.mxu1 }
 0x115   : > { %v432_v17 = vpop.f32.mrf.mxu0 }
 0x116   : > { %v797_v18 = vpop.f32.mrf.mxu1 }
 0x117   : > { %v807_v19 = vpop.f32.mrf.mxu0 }
 0x118   : > { %v359_v20 = vpop.f32.mrf.mxu1 }
 0x119   : > { %v817_v21 = vpop.f32.mrf.mxu0 }
 0x11a   : > { %v615_v22 = vsub.f32 %v817_v21, %v359_v20  ;;  %v802_v23 = vpop.f32.mrf.mxu1 }
 0x11b   : > { %v595_v24 = vpop.f32.mrf.mxu0 }
 0x11c   : > { %v620_v25 = vmax.f32 %v615_v22, 0.0  ;;  %v614_v26 = vsub.f32 %v595_v24, %v286_v16  ;;  %v505_v27 = vpop.f32.mrf.mxu1 }
 0x11d   : > { %v820_v28 = vpop.f32.mrf.mxu0 }
 0x11e   : > { %v619_v29 = vmax.f32 %v614_v26, 0.0  ;;  %v617_v30 = vsub.f32 %v820_v28, %v505_v27  ;;  %v812_v31 = vpop.f32.mrf.mxu1  ;;  %v624_v33 = vsel %vm618_vm3, %v620_v25, 0.0 }
 0x11f   : > { %v605_v32 = vpop.f32.mrf.mxu0  ;;  %v628_v39 = vsel %vm216_vm2, %v624_v33, 0.0 }
 0x120   : > { %v623_v34 = vsel %vm618_vm3, %v619_v29, 0.0  ;;  %v622_v35 = vmax.f32 %v617_v30, 0.0  ;;  %v616_v36 = vsub.f32 %v605_v32, %v432_v17 }
 0x121   : > { %v627_v37 = vsel %vm216_vm2, %v623_v34, 0.0 }
 0x122   : > { %v621_v38 = vmax.f32 %v616_v36, 0.0  ;;  %v629_v40 = vadd.f32 %v628_v39, %v627_v37  ;;  %v626_v41 = vsel %vm618_vm3, %v622_v35, 0.0 }
 0x123   : > { %v632_v45 = vsel %vm216_vm2, %v626_v41, 0.0 }
 0x124   : > { %v625_v42 = vsel %vm618_vm3, %v621_v38, 0.0 }
 0x125   : > { %v630_v43 = vsel %vm216_vm2, %v625_v42, 0.0 }
 0x126   : > { %v631_v44 = vadd.f32 %v630_v43, %v629_v40 }
 0x128   : > { %v633_v46 = vadd.f32 %v632_v45, %v631_v44 }
 0x12a   : > { %634 = vst.msk [vmem:[%s201_s17] sm:$0xff] %vm216_vm2, %v633_v46 }
 0x12b   : > { %948 = shalt.err (!%p945_p4)
}
 0x12c   : > { %s949_s16 = scalar_lea.hbm %s647_s27, 128  ;;  %s953_s19 = scalar_lea.hbm %s1257_s2, 256 }
 0x12d   : > { %p950_p3 = scmp.ne.s32.totalorder %s647_s27, %s949_s16  ;;  %p954_p12 = scmp.lt.s32.totalorder %s647_s27, %s1257_s2 }
 0x12e   : > { %p955_p8 = scmp.lt.s32.totalorder %s953_s19, %s949_s16 }
 0x12f   : > { %p951_p5 = pnand %p950_p3, %p1267_p1 }
 0x130   : > { %p956_p6 = por %p955_p8, %p954_p12 }
 0x131   : > { %p952_p11 = pneg %p951_p5 }
 0x133   : > { %p957_p13 = pnand %p956_p6, %p952_p11 }
 0x135   : > { %960 = shalt.err (!%p957_p13)
}
 0x136   : > { %825 = dma.vmem_to_hbm [thread:$0]  (%p1267_p1), %s650_s28, 128, %s647_s27, %s636_s29  }
 0x137 PF: > { %s661_s3 = sand.u32 1, %s991_s9   ;;  %p1268_p9 = scmp.ne.s32.totalorder %s1263_s22, 0 }
 0x138   : > { %p1269_p7 = scmp.ge.s32.totalorder %s1003_s12, 2  ;;  %s662_s5 = scalar_lea.sflag [#allocation4], %s661_s3 }
 0x13a   : > { %p835_p10 = pnand %p1269_p7, %p1268_p9 }
 0x13c   : > { %p836_p0 = pneg %p835_p10 }
 0x13e   : > { %986 = dma.done.wait (%p836_p0), %s662_s5, 128  }
 0x13f   : > { %988 = vsyncadd (%p836_p0), %s662_s5, 4294967168  ;;  %p18_p2 = scmp.ge.s32.totalorder %s1055_s15, 4   ;;  %s1270_s9 = smov %s995_s10 }
 0x140   : > { %s1271_s10 = smov %s999_s11  ;;  %s1272_s11 = smov %s1067_s18 }
 0x141   : > { %s1273_s12 = smov %s1055_s15  ;;  %20 = sbr.rel (!%p18_p2) target bundleno = 7 (0x7), region = 86 }
 0x146   :  { %667 = vsyncpa [#allocation3], 1 }
 0x147   :  { %669 = vsyncpa [#allocation3 + $0x1], 1 }
 0x148   :  { %670 = vsyncpa [#allocation6], 1 }
 0x149   :  { %672 = vsyncpa [#allocation6 + $0x1], 1 }
 0x14a   :  { %673 = vsyncpa [#allocation4], 1 }
 0x14b   :  { %675 = vsyncpa [#allocation4 + $0x1], 1 }

</bundles_post_ra>
